<compile_context>
chip_gen: v7x
topology: tpu7x:2x2x1
jax: 0.10.0
libtpu: 0.0.40
codegen_flags: <defaults>
</compile_context>

<pallas_src>
import functools
import math

import jax
import jax.numpy as jnp
import numpy as np
from jax.experimental import pallas as pl
from jax.experimental.pallas import tpu as pltpu


# ---------------------------------------------------------------------------
# Small helpers
# ---------------------------------------------------------------------------
def _pick_vmem_limit():
  """Device-aware VMEM budget: ~7/8 of physical VMEM, capped at 112 MiB."""
  cap = None
  try:
    cap = pltpu.get_tpu_info().vmem_capacity_bytes
  except Exception:
    cap = None
  if not cap:
    cap = 64 * 1024 * 1024  # conservative default: v7x per-core VMEM
  return min(int(cap) * 7 // 8, 112 * 1024 * 1024)


_BUFFERED_OK = None


def _single_buffer_supported():
  """Probe (once) whether this build honors pipeline_mode=pl.Buffered(1)."""
  global _BUFFERED_OK
  if _BUFFERED_OK is None:
    try:
      def probe(w_ref, o_ref):
        o_ref[...] = w_ref[...] * 2.0

      spec = pl.BlockSpec((8, 128), lambda i: (0, 0),
                          pipeline_mode=pl.Buffered(1))
      out = pl.pallas_call(
          probe,
          out_shape=jax.ShapeDtypeStruct((8, 128), jnp.float32),
          grid=(2,),
          in_specs=[spec],
          out_specs=pl.BlockSpec((8, 128), lambda i: (0, 0)),
      )(jnp.ones((8, 128), jnp.float32))
      jax.block_until_ready(out)
      _BUFFERED_OK = True
    except Exception:
      _BUFFERED_OK = False
  return _BUFFERED_OK


def _resident_spec(shape):
  """BlockSpec for grid-invariant weights/biases: constant index_map and, when
  supported, a single pipeline buffer (a second buffer for a constant block is
  pure VMEM waste)."""
  index_map = lambda *_: (0,) * len(shape)
  if _single_buffer_supported():
    return pl.BlockSpec(shape, index_map, pipeline_mode=pl.Buffered(1))
  return pl.BlockSpec(shape, index_map)


def _split_heads(t, num_heads, dim_head):
  """(T, H*dh) -> (H, T, dh): single relayout (reshape + major-dim transpose)."""
  return jnp.transpose(t.reshape(t.shape[0], num_heads, dim_head), (1, 0, 2))


def _merge_heads(t):
  """(H, T, dh) -> (T, H*dh): inverse relayout."""
  h, tq, dh = t.shape
  return jnp.transpose(t, (1, 0, 2)).reshape(tq, h * dh)


# ---------------------------------------------------------------------------
# Pass 1: K/V projection (+ head-major relayout), once per KV tile.
# ---------------------------------------------------------------------------
def _kv_proj_kernel(cr_ref, wk_ref, bk_ref, wv_ref, bv_ref, kh_ref, vh_ref,
                    *, num_heads, dim_head):
  cr = cr_ref[0].astype(wk_ref.dtype)                                # (TKV, Dc)
  k = jnp.dot(cr, wk_ref[...], preferred_element_type=jnp.float32) + bk_ref[...]
  v = jnp.dot(cr, wv_ref[...], preferred_element_type=jnp.float32) + bv_ref[...]
  kh_ref[0] = _split_heads(k, num_heads, dim_head).astype(kh_ref.dtype)
  vh_ref[0] = _split_heads(v, num_heads, dim_head).astype(vh_ref.dtype)


# ---------------------------------------------------------------------------
# Pass 2: flash attention (online softmax) + fused Q / output projections.
# ---------------------------------------------------------------------------
def _flash_attn_kernel(x_ref, kh_ref, vh_ref, wq_ref, bq_ref, wo_ref, bo_ref,
                       o_ref, qh_sc, m_sc, l_sc, acc_sc,
                       *, num_heads, dim_head, scale):
  ki = pl.program_id(2)

  @pl.when(ki == 0)
  def _init():
    # Q projection once per (batch, q tile): one full-width (TQ,D)@(D,D) GEMM;
    # 1/sqrt(dh) folded into q; a single head-split relayout (no per-head loop).
    x = x_ref[0].astype(wq_ref.dtype)                                # (TQ, D)
    q = jnp.dot(x, wq_ref[...], preferred_element_type=jnp.float32) + bq_ref[...]
    qh_sc[...] = _split_heads(q * scale, num_heads, dim_head).astype(qh_sc.dtype)
    m_sc[...] = jnp.full(m_sc.shape, -jnp.inf, m_sc.dtype)
    l_sc[...] = jnp.zeros(l_sc.shape, l_sc.dtype)
    acc_sc[...] = jnp.zeros(acc_sc.shape, acc_sc.dtype)

  kh = kh_ref[0]                                                     # (H, TKV, dh)
  vh = vh_ref[0]
  # Head-batched scores: (H,TQ,dh) x (H,TKV,dh) -> (H,TQ,TKV), f32 accumulation.
  s = jnp.einsum('hqd,hkd->hqk', qh_sc[...], kh,
                 preferred_element_type=jnp.float32)

  # Online (flash) softmax update.
  m_prev = m_sc[...]                                                 # (H, TQ, 1)
  m_new = jnp.maximum(m_prev, jnp.max(s, axis=-1, keepdims=True))
  alpha = jnp.exp(m_prev - m_new)
  p = jnp.exp(s - m_new)                                             # (H, TQ, TKV)
  l_sc[...] = alpha * l_sc[...] + jnp.sum(p, axis=-1, keepdims=True)
  acc_sc[...] = alpha * acc_sc[...] + jnp.einsum(
      'hqk,hkd->hqd', p.astype(vh.dtype), vh,
      preferred_element_type=jnp.float32)
  m_sc[...] = m_new

  @pl.when(ki == pl.num_programs(2) - 1)
  def _finalize():
    # EUP reciprocal + one Newton step (no VPU divide).
    l = l_sc[...]
    inv_l = pl.reciprocal(l, approx=True)
    inv_l = inv_l * (2.0 - l * inv_l)
    out_h = acc_sc[...] * inv_l                                      # (H, TQ, dh)
    packed = _merge_heads(out_h)                                     # (TQ, D)
    out = jnp.dot(packed.astype(wo_ref.dtype), wo_ref[...],
                  preferred_element_type=jnp.float32) + bo_ref[...]
    o_ref[0] = out.astype(o_ref.dtype)


# ---------------------------------------------------------------------------
# Wrapper
# ---------------------------------------------------------------------------
def cross_attention(x, cross, params, num_heads, *, block_q=256, block_kv=None,
                    compute_dtype=jnp.bfloat16):
  """Pallas flash cross-attention matching CrossAttention.forward.

  x: (B, S, d_embed); cross: (B, S_kv, d_cross).  Weights are stored as
  (in_features, out_features) (transpose of nn.Linear); biases as (1, out).
  """
  wq, bq, wk, bk, wv, bv, wo, bo = params
  B, S, D = x.shape
  S_kv, Dc = cross.shape[1], cross.shape[2]
  assert cross.shape[0] == B
  assert D % num_heads == 0
  dim_head = D // num_heads
  cd = compute_dtype

  vmem_limit = _pick_vmem_limit()
  if block_kv is None:
    # Bigger KV tiles on 128 MiB-VMEM parts (v5e/v6e), smaller on v7x (64 MiB).
    block_kv = 512 if vmem_limit >= (96 << 20) else 256
  block_q = min(block_q, S)
  block_kv = min(block_kv, S_kv)
  assert S % block_q == 0 and S_kv % block_kv == 0, (
      "sequence lengths must tile evenly (pad inputs or adjust block sizes)")
  n_q = S // block_q
  n_kv = S_kv // block_kv

  # Cast weights once to the MXU compute dtype (bf16 by default).  Biases stay
  # f32 because they add into f32 accumulators.
  wq_c, wk_c, wv_c, wo_c = (w.astype(cd) for w in (wq, wk, wv, wo))
  bq_f, bk_f, bv_f, bo_f = (b.astype(jnp.float32) for b in (bq, bk, bv, bo))

  def compiler(sem):
    return pltpu.CompilerParams(dimension_semantics=sem,
                                vmem_limit_bytes=vmem_limit)

  # ---- Pass 1: K/V projection -> head-major (B, H, S_kv, dh) in HBM --------
  kv_struct = jax.ShapeDtypeStruct((B, num_heads, S_kv, dim_head), cd)
  kv_out_spec = pl.BlockSpec((1, num_heads, block_kv, dim_head),
                             lambda b, ki: (b, 0, ki, 0))
  k_h, v_h = pl.pallas_call(
      functools.partial(_kv_proj_kernel, num_heads=num_heads,
                        dim_head=dim_head),
      out_shape=(kv_struct, kv_struct),
      grid_spec=pltpu.PrefetchScalarGridSpec(
          num_scalar_prefetch=0,
          grid=(B, n_kv),
          in_specs=[
              pl.BlockSpec((1, block_kv, Dc), lambda b, ki: (b, ki, 0)),  # cross
              _resident_spec((Dc, D)),                                    # Wk
              _resident_spec((1, D)),                                     # bk
              _resident_spec((Dc, D)),                                    # Wv
              _resident_spec((1, D)),                                     # bv
          ],
          out_specs=(kv_out_spec, kv_out_spec),
      ),
      compiler_params=compiler(("parallel", "parallel")),
  )(cross, wk_c, bk_f, wv_c, bv_f)

  # ---- Pass 2: flash attention + fused Q / output projections --------------
  kv_in_spec = pl.BlockSpec((1, num_heads, block_kv, dim_head),
                            lambda b, qi, ki: (b, 0, ki, 0))
  out = pl.pallas_call(
      functools.partial(_flash_attn_kernel, num_heads=num_heads,
                        dim_head=dim_head, scale=1.0 / math.sqrt(dim_head)),
      out_shape=jax.ShapeDtypeStruct((B, S, D), x.dtype),
      grid_spec=pltpu.PrefetchScalarGridSpec(
          num_scalar_prefetch=0,
          grid=(B, n_q, n_kv),                 # KV reduction innermost
          in_specs=[
              pl.BlockSpec((1, block_q, D), lambda b, qi, ki: (b, qi, 0)),  # x
              kv_in_spec,                                                   # K_h
              kv_in_spec,                                                   # V_h
              _resident_spec((D, D)),                                       # Wq
              _resident_spec((1, D)),                                       # bq
              _resident_spec((D, D)),                                       # Wout
              _resident_spec((1, D)),                                       # bout
          ],
          out_specs=pl.BlockSpec((1, block_q, D), lambda b, qi, ki: (b, qi, 0)),
          scratch_shapes=[
              pltpu.VMEM((num_heads, block_q, dim_head), cd),           # q heads
              pltpu.VMEM((num_heads, block_q, 1), jnp.float32),         # running max
              pltpu.VMEM((num_heads, block_q, 1), jnp.float32),         # running sum
              pltpu.VMEM((num_heads, block_q, dim_head), jnp.float32),  # accumulator
          ],
      ),
      compiler_params=compiler(("parallel", "parallel", "arbitrary")),
  )(x, k_h, v_h, wq_c, bq_f, wo_c, bo_f)
  return out


# ---------------------------------------------------------------------------
# Pure-JAX reference & param init
# ---------------------------------------------------------------------------
def cross_attention_ref(x, cross, params, num_heads):
  wq, bq, wk, bk, wv, bv, wo, bo = params
  B, S, D = x.shape
  S_kv = cross.shape[1]
  dh = D // num_heads
  q = (x @ wq + bq).reshape(B, S, num_heads, dh).transpose(0, 2, 1, 3)
  k = (cross @ wk + bk).reshape(B, S_kv, num_heads, dh).transpose(0, 2, 1, 3)
  v = (cross @ wv + bv).reshape(B, S_kv, num_heads, dh).transpose(0, 2, 1, 3)
  w = jnp.einsum("bhqd,bhkd->bhqk", q, k) / math.sqrt(dh)
  w = jax.nn.softmax(w, axis=-1)
  o = jnp.einsum("bhqk,bhkd->bhqd", w, v)
  o = o.transpose(0, 2, 1, 3).reshape(B, S, D)
  return o @ wo + bo


def init_params(key, d_embed, d_cross):
  """Deterministic init mimicking nn.Linear's U(-1/sqrt(fan_in), 1/sqrt(fan_in))."""
  ks = jax.random.split(key, 8)

  def lin(kw, kb, fan_in, fan_out):
    bound = 1.0 / math.sqrt(fan_in)
    w = jax.random.uniform(kw, (fan_in, fan_out), jnp.float32, -bound, bound)
    b = jax.random.uniform(kb, (1, fan_out), jnp.float32, -bound, bound)
    return w, b

  wq, bq = lin(ks[0], ks[1], d_embed, d_embed)
  wk, bk = lin(ks[2], ks[3], d_cross, d_embed)
  wv, bv = lin(ks[4], ks[5], d_cross, d_embed)
  wo, bo = lin(ks[6], ks[7], d_embed, d_embed)
  return (wq, bq, wk, bk, wv, bv, wo, bo)


if __name__ == "__main__":
  B, S, d_embed, d_cross, num_heads = 2, 16, 32, 48, 4

  key = jax.random.PRNGKey(0)
  kx, kc, kp = jax.random.split(key, 3)
  x = jax.random.normal(kx, (B, S, d_embed), jnp.float32)
  cross = jax.random.normal(kc, (B, S, d_cross), jnp.float32)
  params = init_params(kp, d_embed, d_cross)

  ref = cross_attention_ref(x, cross, params, num_heads)

  # 1) f32 compute path, multi-tile (2 q tiles x 2 kv tiles) — exercises the
  #    online softmax across KV tiles; tight tolerance.
  out = cross_attention(x, cross, params, num_heads, block_q=8, block_kv=8,
                        compute_dtype=jnp.float32)
  out = jax.block_until_ready(out)
  np.testing.assert_allclose(np.asarray(out), np.asarray(ref),
                             rtol=1e-4, atol=1e-4)

  # 2) Default bf16 MXU path, single-tile; looser tolerance (bf16 operands).
  out_bf = cross_attention(x, cross, params, num_heads, block_q=16, block_kv=16)
  out_bf = jax.block_until_ready(out_bf)
  np.testing.assert_allclose(np.asarray(out_bf), np.asarray(ref),
                             rtol=5e-2, atol=5e-2)

  # 3) Decoupled KV length (real cross-attention context shorter/longer than S).
  S_kv = 24
  cross2 = jax.random.normal(jax.random.PRNGKey(1), (B, S_kv, d_cross),
                             jnp.float32)
  ref2 = cross_attention_ref(x, cross2, params, num_heads)
  out2 = cross_attention(x, cross2, params, num_heads, block_q=8, block_kv=8,
                         compute_dtype=jnp.float32)
  out2 = jax.block_until_ready(out2)
  np.testing.assert_allclose(np.asarray(out2), np.asarray(ref2),
                             rtol=1e-4, atol=1e-4)

  print("KERNEL_OK")
</pallas_src>

<mosaic_0001>
module attributes {stable_mosaic.version = 11 : i64} {
  func.func @probe(%arg0: i32, %arg1: memref<8x128xf32, #tpu.memory_space<vmem>>, %arg2: memref<8x128xf32, #tpu.memory_space<vmem>>) attributes {dimension_semantics = [#tpu.dimension_semantics<arbitrary>], iteration_bounds = array<i64: 2>, scalar_prefetch = 0 : i64, scratch_operands = 0 : i64, tpu.core_type = #tpu.core_type<tc>, window_params = [{pipeline_mode = #tpu.pipeline_mode<synchronous>, transform_indices = @transform_0, window_bounds = array<i64: 8, 128>}, {pipeline_mode = #tpu.pipeline_mode<synchronous>, transform_indices = @transform_1, window_bounds = array<i64: 8, 128>}]} {
    %c0 = arith.constant 0 : index
    %c0_0 = arith.constant 0 : index
    %0 = vector.load %arg1[%c0, %c0_0] : memref<8x128xf32, #tpu.memory_space<vmem>>, vector<8x128xf32>
    %cst = arith.constant 2.000000e+00 : f32
    %1 = vector.broadcast %cst : f32 to vector<8x128xf32>
    %2 = arith.mulf %0, %1 : vector<8x128xf32>
    %c0_1 = arith.constant 0 : index
    %c0_2 = arith.constant 0 : index
    %3 = vector.load %arg2[%c0_1, %c0_2] : memref<8x128xf32, #tpu.memory_space<vmem>>, vector<8x128xf32>
    tpu.vector_store %arg2[%c0_1, %c0_2], %2 {strides = array<i32>} : memref<8x128xf32, #tpu.memory_space<vmem>>, vector<8x128xf32>,
    return
  }
  func.func @transform_0(%arg0: i32) -> (i32, i32) {
    %c0_i32 = arith.constant 0 : i32
    %c0_i32_0 = arith.constant 0 : i32
    %c0_i32_1 = arith.constant 0 : i32
    return %c0_i32, %c0_i32_0 : i32, i32
  }
  func.func @transform_1(%arg0: i32) -> (i32, i32) {
    %c0_i32 = arith.constant 0 : i32
    %c0_i32_0 = arith.constant 0 : i32
    %c0_i32_1 = arith.constant 0 : i32
    return %c0_i32, %c0_i32_0 : i32, i32
  }
}

module attributes {stable_mosaic.version = 11 : i64} {
  func.func @_kv_proj_kernel(%arg0: i32, %arg1: i32, %arg2: memref<1x8x48xf32, #tpu.memory_space<vmem>>, %arg3: memref<48x32xf32, #tpu.memory_space<vmem>>, %arg4: memref<1x32xf32, #tpu.memory_space<vmem>>, %arg5: memref<48x32xf32, #tpu.memory_space<vmem>>, %arg6: memref<1x32xf32, #tpu.memory_space<vmem>>, %arg7: memref<1x4x8x8xf32, #tpu.memory_space<vmem>>, %arg8: memref<1x4x8x8xf32, #tpu.memory_space<vmem>>) attributes {dimension_semantics = [#tpu.dimension_semantics<parallel>, #tpu.dimension_semantics<parallel>], iteration_bounds = array<i64: 2, 2>, scalar_prefetch = 0 : i64, scratch_operands = 0 : i64, tpu.core_type = #tpu.core_type<tc>, window_params = [{transform_indices = @transform_0, window_bounds = array<i64: 1, 8, 48>}, {pipeline_mode = #tpu.pipeline_mode<synchronous>, transform_indices = @transform_1, window_bounds = array<i64: 48, 32>}, {pipeline_mode = #tpu.pipeline_mode<synchronous>, transform_indices = @transform_2, window_bounds = array<i64: 1, 32>}, {pipeline_mode = #tpu.pipeline_mode<synchronous>, transform_indices = @transform_3, window_bounds = array<i64: 48, 32>}, {pipeline_mode = #tpu.pipeline_mode<synchronous>, transform_indices = @transform_4, window_bounds = array<i64: 1, 32>}, {transform_indices = @transform_5, window_bounds = array<i64: 1, 4, 8, 8>}, {transform_indices = @transform_6, window_bounds = array<i64: 1, 4, 8, 8>}]} {
    %c0 = arith.constant 0 : index
    %c0_0 = arith.constant 0 : index
    %c0_1 = arith.constant 0 : index
    %0 = vector.load %arg2[%c0, %c0_0, %c0_1] : memref<1x8x48xf32, #tpu.memory_space<vmem>>, vector<1x8x48xf32>
    %1 = vector.shape_cast %0 : vector<1x8x48xf32> to vector<8x48xf32>
    %c0_2 = arith.constant 0 : index
    %c0_3 = arith.constant 0 : index
    %2 = vector.load %arg3[%c0_2, %c0_3] : memref<48x32xf32, #tpu.memory_space<vmem>>, vector<48x32xf32>
    %cst = arith.constant dense<0.000000e+00> : vector<8x32xf32>
    %3 = tpu.matmul %1, %2, %cst {dimension_numbers = #tpu.dot_dimension_numbers<[1], [0], [0], [1], [0, 0, 1, 1], [], []>} : vector<8x48xf32>, vector<48x32xf32>, vector<8x32xf32> -> vector<8x32xf32>
    %c0_4 = arith.constant 0 : index
    %c0_5 = arith.constant 0 : index
    %4 = vector.load %arg4[%c0_4, %c0_5] : memref<1x32xf32, #tpu.memory_space<vmem>>, vector<1x32xf32>
    %5 = vector.broadcast %4 : vector<1x32xf32> to vector<8x32xf32>
    %6 = arith.addf %3, %5 : vector<8x32xf32>
    %c0_6 = arith.constant 0 : index
    %c0_7 = arith.constant 0 : index
    %7 = vector.load %arg5[%c0_6, %c0_7] : memref<48x32xf32, #tpu.memory_space<vmem>>, vector<48x32xf32>
    %cst_8 = arith.constant dense<0.000000e+00> : vector<8x32xf32>
    %8 = tpu.matmul %1, %7, %cst_8 {dimension_numbers = #tpu.dot_dimension_numbers<[1], [0], [0], [1], [0, 0, 1, 1], [], []>} : vector<8x48xf32>, vector<48x32xf32>, vector<8x32xf32> -> vector<8x32xf32>
    %c0_9 = arith.constant 0 : index
    %c0_10 = arith.constant 0 : index
    %9 = vector.load %arg6[%c0_9, %c0_10] : memref<1x32xf32, #tpu.memory_space<vmem>>, vector<1x32xf32>
    %10 = vector.broadcast %9 : vector<1x32xf32> to vector<8x32xf32>
    %11 = arith.addf %8, %10 : vector<8x32xf32>
    %12 = vector.shape_cast %6 : vector<8x32xf32> to vector<8x4x8xf32>
    %13 = tpu.transpose %12, [1, 0, 2] : vector<8x4x8xf32> -> vector<4x8x8xf32>
    %c0_11 = arith.constant 0 : index
    %c0_12 = arith.constant 0 : index
    %c0_13 = arith.constant 0 : index
    %c0_14 = arith.constant 0 : index
    %14 = vector.load %arg7[%c0_11, %c0_12, %c0_13, %c0_14] : memref<1x4x8x8xf32, #tpu.memory_space<vmem>>, vector<1x4x8x8xf32>
    %15 = vector.shape_cast %14 : vector<1x4x8x8xf32> to vector<4x8x8xf32>
    %16 = vector.shape_cast %13 : vector<4x8x8xf32> to vector<1x4x8x8xf32>
    tpu.vector_store %arg7[%c0_11, %c0_12, %c0_13, %c0_14], %16 {strides = array<i32>} : memref<1x4x8x8xf32, #tpu.memory_space<vmem>>, vector<1x4x8x8xf32>,
    %17 = vector.shape_cast %11 : vector<8x32xf32> to vector<8x4x8xf32>
    %18 = tpu.transpose %17, [1, 0, 2] : vector<8x4x8xf32> -> vector<4x8x8xf32>
    %c0_15 = arith.constant 0 : index
    %c0_16 = arith.constant 0 : index
    %c0_17 = arith.constant 0 : index
    %c0_18 = arith.constant 0 : index
    %19 = vector.load %arg8[%c0_15, %c0_16, %c0_17, %c0_18] : memref<1x4x8x8xf32, #tpu.memory_space<vmem>>, vector<1x4x8x8xf32>
    %20 = vector.shape_cast %19 : vector<1x4x8x8xf32> to vector<4x8x8xf32>
    %21 = vector.shape_cast %18 : vector<4x8x8xf32> to vector<1x4x8x8xf32>
    tpu.vector_store %arg8[%c0_15, %c0_16, %c0_17, %c0_18], %21 {strides = array<i32>} : memref<1x4x8x8xf32, #tpu.memory_space<vmem>>, vector<1x4x8x8xf32>,
    return
  }
  func.func @transform_0(%arg0: i32, %arg1: i32) -> (i32, i32, i32) {
    %c0_i32 = arith.constant 0 : i32
    %c0_i32_0 = arith.constant 0 : i32
    return %arg0, %arg1, %c0_i32 : i32, i32, i32
  }
  func.func @transform_1(%arg0: i32, %arg1: i32) -> (i32, i32) {
    %c0_i32 = arith.constant 0 : i32
    %c0_i32_0 = arith.constant 0 : i32
    %c0_i32_1 = arith.constant 0 : i32
    return %c0_i32, %c0_i32_0 : i32, i32
  }
  func.func @transform_2(%arg0: i32, %arg1: i32) -> (i32, i32) {
    %c0_i32 = arith.constant 0 : i32
    %c0_i32_0 = arith.constant 0 : i32
    %c0_i32_1 = arith.constant 0 : i32
    return %c0_i32, %c0_i32_0 : i32, i32
  }
  func.func @transform_3(%arg0: i32, %arg1: i32) -> (i32, i32) {
    %c0_i32 = arith.constant 0 : i32
    %c0_i32_0 = arith.constant 0 : i32
    %c0_i32_1 = arith.constant 0 : i32
    return %c0_i32, %c0_i32_0 : i32, i32
  }
  func.func @transform_4(%arg0: i32, %arg1: i32) -> (i32, i32) {
    %c0_i32 = arith.constant 0 : i32
    %c0_i32_0 = arith.constant 0 : i32
    %c0_i32_1 = arith.constant 0 : i32
    return %c0_i32, %c0_i32_0 : i32, i32
  }
  func.func @transform_5(%arg0: i32, %arg1: i32) -> (i32, i32, i32, i32) {
    %c0_i32 = arith.constant 0 : i32
    %c0_i32_0 = arith.constant 0 : i32
    %c0_i32_1 = arith.constant 0 : i32
    return %arg0, %c0_i32, %arg1, %c0_i32_0 : i32, i32, i32, i32
  }
  func.func @transform_6(%arg0: i32, %arg1: i32) -> (i32, i32, i32, i32) {
    %c0_i32 = arith.constant 0 : i32
    %c0_i32_0 = arith.constant 0 : i32
    %c0_i32_1 = arith.constant 0 : i32
    return %arg0, %c0_i32, %arg1, %c0_i32_0 : i32, i32, i32, i32
  }
}

</mosaic_0001>

<bundles_post_ra>
// kernel: tpu_custom_call.1
= control target key start
LH: loop header
LB: loop body
LE: loop exit
PB: predicated region body
PF: predicated region fallthrough
CT: control target
= control target key end

     0   :  { %6 = vsyncpa [#allocation3], 0  ;;  %s341_s0 = inlined_call_operand.hbm [shape: f32[8,128], index: 0, kind: input, shape index: {}]   ;;  %s342_s1 = inlined_call_operand.hbm [shape: f32[8,128], index: 1, kind: output, shape index: {}]  }
   0x1   :  { %7 = vsyncpa [#allocation4], 0  ;;  %s262_s6 = smov 0  }
   0x2 LB: > { %s145_s7 = sadd.s32 4294967295, %s248_s6   ;;  %p146_p0 = scmp.ge.s32.totalorder %s248_s6, 1  ;;  %s248_s6 = sphi %s262_s6, %s13_s6  }
   0x3   : > { %p60_p1 = scmp.lt.s32.totalorder %s248_s6, 3  ;;  %p276_p3 = scmp.eq.s32.totalorder %s145_s7, 0 }
   0x4   : > { %s250_s10 = smov [#allocation2]   ;;  %s180_s15 = scalar_lea.hbm %s341_s0, 128 }
   0x5   : > { %p270_p2 = pnand %p146_p0, %p60_p1  ;;  %s73_s11 = sshll.u32 %s250_s10, 4  ;;  %s74_s11 = int_to_ptr.vmem [resolvable:$true] %s73_s11 }
   0x6   : > { %s347_s9 = scalar_select %p276_p3, 1, 0 }
   0x7   : > { %s346_s8 = scalar_select %p270_p2, 1, 0 }
   0x8   : > { %p162_p4 = pneg %p270_p2  ;;  %p181_p6 = scmp.ne.s32.totalorder %s341_s0, %s180_s15 }
   0x9   : > { %p187_p10 = scmp.lt.u32.totalorder %s180_s15, %s341_s0 }
   0xa   : > { %p284_p5 = pnand %p276_p3, %p162_p4 }
   0xc   : > { %p182_p7 = pneg %p284_p5 }
   0xe   : > { %p183_p8 = pnand %p182_p7, %p181_p6 }
  0x10   : > { %p184_p9 = pneg %p183_p8 }
  0x12   : > { %p189_p11 = pnand %p187_p10, %p184_p9 }
  0x14   : > { %192 = shalt.err (!%p189_p11)
}
  0x15   : > { %s193_s20 = scalar_lea.vmem %s74_s11, 128  ;;  %p201_p1 = scmp.lt.s32.totalorder %s74_s11, %s74_s11 }
  0x16   : > { %p194_p12 = scmp.ne.s32.totalorder %s74_s11, %s193_s20  ;;  %p202_p4 = scmp.lt.s32.totalorder %s193_s20, %s193_s20 }
  0x18   : > { %p196_p13 = pnand %p194_p12, %p182_p7  ;;  %p203_p3 = por %p202_p4, %p201_p1 }
  0x1a   : > { %p197_p0 = pneg %p196_p13 }
  0x1c   : > { %p204_p2 = pnand %p203_p3, %p197_p0 }
  0x1e   : > { %207 = shalt.err (!%p204_p2)
}
  0x1f   : > { %165 = dma.hbm_to_vmem [thread:$0]  (!%p284_p5), %s341_s0, 128, %s74_s11, [#allocation3]  }
  0x20   : > { %p349_p6 = scmp.ne.s32.totalorder %s346_s8, 0 }
  0x21   : > { %p350_p8 = scmp.ne.s32.totalorder (!%p349_p6), %s347_s9, 0 }
  0x22   : > { %86 = sbr.rel (%p349_p6) target bundleno = 67 (0x43), region = 24 }
  0x29   : > { %239 = dma.done.wait (%p350_p8), [#allocation3], 128  }
  0x2a   : > { %241 = vsyncadd (%p350_p8), [#allocation3], 4294967168  ;;  %s251_s23 = smov [#allocation5]   ;;  %v96_v0 = vld [vmem:[#allocation2] sm:$0xff]  ;;  %p312_p2 = scmp.eq.s32.totalorder %s145_s7, 1 }
  0x2b   : > { %s106_s24 = sshll.u32 %s251_s23, 4  ;;  %v97_v1 = vmul.f32 2.0, %v96_v0  ;;  %s107_s24 = int_to_ptr.vmem [resolvable:$true] %s106_s24 }
  0x2c   : > { %s208_s26 = scalar_lea.vmem %s107_s24, 128  ;;  %p215_p9 = scmp.lt.s32.totalorder %s107_s24, %s107_s24 }
  0x2d   : > { %98 = vst [vmem:[#allocation5] sm:$0xff] %v97_v1  ;;  %p209_p3 = scmp.ne.s32.totalorder %s107_s24, %s208_s26  ;;  %p216_p10 = scmp.lt.s32.totalorder %s208_s26, %s208_s26 }
  0x2f   : > { %p210_p5 = pnand %p209_p3, %p312_p2  ;;  %p217_p11 = por %p216_p10, %p215_p9 }
  0x31   : > { %p211_p7 = pneg %p210_p5 }
  0x33   : > { %p218_p12 = pnand %p217_p11, %p211_p7 }
  0x35   : > { %221 = shalt.err (!%p218_p12)
}
  0x36   : > { %s222_s29 = scalar_lea.hbm %s342_s1, 128 }
  0x37   : > { %p223_p13 = scmp.ne.s32.totalorder %s342_s1, %s222_s29  ;;  %p228_p4 = scmp.lt.u32.totalorder %s222_s29, %s342_s1 }
  0x39   : > { %p224_p0 = pnand %p223_p13, %p312_p2 }
  0x3b   : > { %p225_p1 = pneg %p224_p0 }
  0x3d   : > { %p230_p6 = pnand %p228_p4, %p225_p1 }
  0x3f   : > { %233 = shalt.err (!%p230_p6)
}
  0x40   : > { %159 = dma.vmem_to_hbm [thread:$0]  (%p312_p2), %s107_s24, 128, %s342_s1, [#allocation4]  }
  0x41   : > { %243 = dma.done.wait (%p312_p2), [#allocation4], 128  }
  0x42   : > { %245 = vsyncadd (%p312_p2), [#allocation4], 4294967168 }
  0x43 PF: > { %s13_s6 = sadd.s32 1, %s248_s6  }
  0x44   : > { %p10_p8 = scmp.ge.s32.totalorder %s13_s6, 4  }
  0x46   :  { %12 = sbr.rel (!%p10_p8) target bundleno = 2 (0x2), region = 53 }
  0x4d   :  { %119 = vsyncpa [#allocation3], 1 }
  0x4e   :  { %121 = vsyncpa [#allocation3 + $0x1], 1 }
  0x4f   :  { %122 = vsyncpa [#allocation4], 1 }
  0x50   :  { %124 = vsyncpa [#allocation4 + $0x1], 1 }

// kernel: tpu_custom_call.1
= control target key start
LH: loop header
LB: loop body
LE: loop exit
PB: predicated region body
PF: predicated region fallthrough
CT: control target
= control target key end

     0   :  { %s1212_s21 = smov 0   ;;  %s1214_s22 = smov 0   ;;  %s1406_s0 = inlined_call_operand.vmem [shape: f32[2,16,48], index: 0, kind: input, shape index: {}]   ;;  %s1407_s1 = inlined_call_operand.vmem [shape: f32[48,32], index: 1, kind: input, shape index: {}]   ;;  %s1408_s2 = inlined_call_operand.vmem [shape: f32[1,32], index: 2, kind: input, shape index: {}]   ;;  %s1409_s3 = inlined_call_operand.vmem [shape: f32[48,32], index: 3, kind: input, shape index: {}]   ;;  %s1410_s4 = inlined_call_operand.vmem [shape: f32[1,32], index: 4, kind: input, shape index: {}]   ;;  %s1411_s5 = inlined_call_operand.vmem [shape: f32[2,4,16,8], index: 5, kind: output, shape index: {0}]   ;;  %s1412_s6 = inlined_call_operand.vmem [shape: f32[2,4,16,8], index: 6, kind: output, shape index: {1}]  }
   0x1   :  { %s1216_s23 = smov 0   ;;  %s1218_s24 = smov 0  }
   0x2   :  { %s1220_s25 = smov 0   ;;  %s1222_s26 = smov 0  }
   0x3   :  { %s1224_s27 = smov 0  }
   0x4 LB: > { %s26_s28 = sadd.s32 1, %s1159_s25  ;;  %s29_s29 = sadd.s32 1, %s1163_s26  ;;  %s1167_s27 = sphi %s1224_s27, %s17_s27   ;;  %s1163_s26 = sphi %s1222_s26, %s1419_s26   ;;  %s1159_s25 = sphi %s1220_s25, %s1418_s25   ;;  %s1155_s24 = sphi %s1218_s24, %s1417_s24   ;;  %s1151_s23 = sphi %s1216_s23, %s1416_s23   ;;  %s1147_s22 = sphi %s1214_s22, %s1415_s22   ;;  %s1143_s21 = sphi %s1212_s21, %s1414_s21  }
   0x5   : > { %p27_p0 = scmp.ge.s32.totalorder %s26_s28, 2  ;;  %s962_s30 = sadd.s32 4294967295, %s1167_s27  }
   0x6   : > { %p160_p1 = scmp.ne.s32.totalorder %s1147_s22, %s1143_s21  ;;  %p161_p2 = scmp.eq.s32.totalorder %s962_s30, 3 }
   0x7   : > { %s1421_s28 = smov (%p27_p0, %s26_s28), 0  ;;  %s1423_s29 = smov (!%p27_p0, %s29_s29), %s1163_s26 }
   0x8   : > { %s146_s7 = ssub.s32 %s1159_s25, %s1421_s28  ;;  %p31_p3 = scmp.ge.s32.totalorder %s1423_s29, 2 }
   0x9   : > { %p966_p4 = scmp.ge.s32.totalorder %s1167_s27, 1  ;;  %p1258_p5 = por %p161_p2, %p160_p1 }
   0xa   : > { %p236_p6 = scmp.lt.s32.totalorder %s1167_s27, 5  ;;  %s1425_s29 = smov (%p31_p3, %s1423_s29), 0 }
   0xb   : > { %s145_s9 = ssub.s32 %s1163_s26, %s1425_s29  ;;  %s150_s11 = sadd.s32 1, %s1147_s22 }
   0xc   : > { %p237_p7 = pnand %p966_p4, %p236_p6  ;;  %s147_s10 = sor.u32 %s146_s7, %s145_s9 }
   0xd   : > { %p148_p8 = scmp.eq.s32.totalorder %s147_s10, 0  ;;  %v281_v0 = vld [vmem:[%s1407_s1] sm:$0xff] (!%p237_p7)  ;;  %v282_v1 = vld [vmem:[%s1407_s1 + $0x8] sm:$0xff] (!%p237_p7)  ;;  %v1169_v3 = vmov (!%p237_p7), 0.0|0.0   ;;  %v283_v6 = vld [vmem:[%s1407_s1 + $0x10] sm:$0xff] (!%p237_p7)  ;;  %p272_p9 = scmp.lt.s32.totalorder (!%p237_p7), %s1155_s24, 1  ;;  %v466_v31 = vlaneseq (!%p237_p7) }
   0xe   : > { %240 = sbr.rel (%p237_p7) target bundleno = 397 (0x18d), region = 40  ;;  %v368_v2 = vld [vmem:[%s1409_s3] sm:$0xff] (!%p237_p7)  ;;  %1031 = vmatprep.subr.bf16.mxu0 (!%p237_p7), %v1169_v3  ;;  %v1032_v4 = vpack.c.bf16 (!%p237_p7), %v282_v1, %v281_v0  ;;  %1040 = vmatprep.subr.bf16.mxu1 (!%p237_p7), %v1169_v3  ;;  %v369_v5 = vld [vmem:[%s1409_s3 + $0x8] sm:$0xff] (!%p237_p7)  ;;  %v284_v7 = vld [vmem:[%s1407_s1 + $0x18] sm:$0xff] (!%p237_p7)  ;;  %p274_p10 = scmp.lt.s32.totalorder (!%p237_p7), %s1151_s23, 1  ;;  %vm1170_vm0 = vmmov (!%p237_p7), 0  }
   0xf   : > { %s1269_s12 = scalar_select %p148_p8, %s1147_s22, %s150_s11  }
  0x10   : > { %v1041_v8 = vpack.c.bf16 (!%p237_p7), %v369_v5, %v368_v2  ;;  %v370_v9 = vld [vmem:[%s1409_s3 + $0x10] sm:$0xff] (!%p237_p7)  ;;  %v371_v10 = vld [vmem:[%s1409_s3 + $0x18] sm:$0xff] (!%p237_p7)  ;;  %v1171_v11 = vmov (!%p237_p7), 0.0   ;;  %1033 = vmatpush3.bf16.msra.mxu0 (!%p237_p7), %v1032_v4  ;;  %v1035_v12 = vpack.c.bf16 (!%p237_p7), %v284_v7, %v283_v6  ;;  %v285_v14 = vld [vmem:[%s1407_s1 + $0x20] sm:$0xff] (!%p237_p7)  ;;  %vm294_vm1 = vcmask (!%p237_p7), 392192   ;;  %s1172_s9 = smov (!%p237_p7), 104  }
  0x11   : > { %1013 = vmatprep.mubr.msk.f32.mxu0 (!%p237_p7), %vm1170_vm0, %v1171_v11  ;;  %1028 = vmatprep.mubr.msk.f32.mxu1 (!%p237_p7), %vm1170_vm0, %v1171_v11  ;;  %v1044_v13 = vpack.c.bf16 (!%p237_p7), %v371_v10, %v370_v9  ;;  %v286_v15 = vld [vmem:[%s1407_s1 + $0x28] sm:$0xff] (!%p237_p7)  ;;  %v372_v16 = vld [vmem:[%s1409_s3 + $0x20] sm:$0xff] (!%p237_p7)  ;;  %s1173_s10 = smov (!%p237_p7), 120   ;;  %s1174_s11 = smov (!%p237_p7), 112   ;;  %v1175_v29 = vmov (!%p237_p7), 1983009808  }
  0x12   : > { %1034 = vmatprep.subr.bf16.mxu0 (!%p237_p7), %v1169_v3  ;;  %1042 = vmatpush3.bf16.msra.mxu1 (!%p237_p7), %v1041_v8  ;;  %v373_v17 = vld [vmem:[%s1409_s3 + $0x28] sm:$0xff] (!%p237_p7)  ;;  %v1038_v18 = vpack.c.bf16 (!%p237_p7), %v286_v15, %v285_v14  ;;  %v971_v21 = vld [vmem:[%s1408_s2] ss:$0 sm:$0xff] (!%p237_p7)  ;;  %v464_v30 = vunpack.c.l.s4 (!%p237_p7), %v1175_v29  ;;  %v1176_v32 = vmov (!%p237_p7), 1934713408   ;;  %v467_v35 = vshrl.u32 (!%p237_p7), %v466_v31, 7 }
  0x13   : > { %1043 = vmatprep.subr.bf16.mxu1 (!%p237_p7), %v1169_v3  ;;  %v1047_v19 = vpack.c.bf16 (!%p237_p7), %v373_v17, %v372_v16  ;;  %v973_v23 = vld [vmem:[%s1410_s4] ss:$0 sm:$0xff] (!%p237_p7)  ;;  %v496_v33 = vunpack.c.l.s4 (!%p237_p7), %v1176_v32  ;;  %vm597_vm2 = vcmask (!%p237_p7), 64512   ;;  %s263_s13 = sand.u32 (!%p237_p7), 1, %s1143_s21  }
  0x14   : > { %1036 = vmatpush3.bf16.msra.mxu0 (!%p237_p7), %v1035_v12  ;;  %v465_v34 = vunpack.c.0.s8 (!%p237_p7), %v464_v30  ;;  %s1347_s21 = sshll.u32 (!%p237_p7), %s263_s13, 5 }
  0x15   : > { %s273_s16 = scalar_select %p272_p9, %s1155_s24, 1  ;;  %1037 = vmatprep.subr.bf16.mxu0 %v1169_v3  ;;  %v497_v38 = vunpack.c.0.s8 %v496_v33 }
  0x16   : > { %s275_s30 = scalar_select %p274_p10, %s1151_s23, 1  ;;  %1045 = vmatpush3.bf16.msra.mxu1 %v1044_v13  ;;  %v1322_v39 = vsub.s32 %v465_v34, %v467_v35 }
  0x17   : > { %s969_s7 = sshll.u32 %s273_s16, 1  ;;  %1046 = vmatprep.subr.bf16.mxu1 %v1169_v3  ;;  %v1324_v46 = vsub.s32 %v497_v38, %v467_v35  ;;  %s981_s17 = sshll.u32 (%p1258_p5), %s1155_s24, 3 }
  0x18   : > { %s277_s14 = sadd.s32 %s969_s7, %s275_s30  ;;  %1039 = vmatpush3.bf16.msra.mxu0 %v1038_v18  ;;  %s764_s18 = sadd.s32 (%p1258_p5), %s1151_s23, %s981_s17 }
  0x19   : > { %s970_s15 = sshll.u32 %s277_s14, 3  ;;  %s265_s14 = scalar_lea.vmem [#allocation2], %s1347_s21 }
  0x1a   : > { %s279_s19 = scalar_lea.vmem %s1406_s0, %s970_s15  ;;  %1048 = vmatpush3.bf16.msra.mxu1 %v1047_v19  ;;  %s271_s15 = scalar_lea.vmem [#allocation3], %s1347_s21 }
  0x1b   : > { %v280_v20 = vld [vmem:[%s279_s19] sm:$0xff]  ;;  %s982_s19 = sshll.u32 (%p1258_p5), %s764_s18, 3 }
  0x1c   : > { %1014 = vmatmul.mubr.msk.f32.vlgmr.msra.gmra.mrb[0].mxu0 %vm294_vm1, %v280_v20  ;;  %s766_s30 = scalar_lea.vmem (%p1258_p5), %s1411_s5, %s982_s19 }
  0x1d   : > { %1029 = vmatmul.mubr.msk.f32.vlgmr.msra.gmra.mrb[0].mxu1 %vm294_vm1, %v280_v20 }
  0xef   : > { %v364_v22 = vpop.f32.mrb[0].mxu0 }
  0xf0   : > { %v365_v24 = vadd.f32 %v971_v21, %v364_v22  ;;  %v1015_v25 = vpop.f32.mrb[1].mxu0  ;;  %v447_v26 = vpop.f32.mrb[0].mxu1 }
  0xf1   : > { %v1030_v27 = vpop.f32.mrb[1].mxu1  ;;  %v448_v28 = vadd.f32 %v973_v23, %v447_v26 }
  0xf2   : > { %458 = vrot.lane.b32.xlu1 %v365_v24, %s1172_s9  ;;  %452 = vrot.lane.b32.xlu0 %v365_v24, %s1173_s10 }
  0xf6   : > { %603 = vrot.lane.b32.xlu1 %v448_v28, %s1173_s10  ;;  %455 = vrot.lane.b32.xlu0 %v365_v24, %s1174_s11 }
  0xfa   : > { %609 = vrot.lane.b32.xlu1 %v448_v28, %s1172_s9  ;;  %606 = vrot.lane.b32.xlu0 %v448_v28, %s1174_s11 }
 0x164   : > { %v459_v36 = vpop.permute.xlu1 %458  ;;  %v453_v37 = vpop.permute.xlu0 %452 }
 0x165   : > { %v477_v40 = vcombine.low %v453_v37, %v459_v36  ;;  %v478_v41 = vcombine.high %v453_v37, %v459_v36 }
 0x167   : > { %v485_v47 = vrot.slane %v477_v40, %v1322_v39  ;;  %v492_v48 = vrot.slane %v478_v41, %v1322_v39 }
 0x168   : > { %v604_v42 = vpop.permute.xlu1 %603  ;;  %v456_v43 = vpop.permute.xlu0 %455 }
 0x169   : > { %v461_v44 = vcombine.low %v365_v24, %v456_v43  ;;  %v462_v45 = vcombine.high %v365_v24, %v456_v43 }
 0x16b   : > { %v469_v49 = vrot.slane %v461_v44, %v1322_v39  ;;  %v476_v50 = vrot.slane %v462_v45, %v1322_v39 }
 0x16c   : > { %v610_v51 = vpop.permute.xlu1 %609  ;;  %v607_v52 = vpop.permute.xlu0 %606 }
 0x16d   : > { %v493_v53 = vcombine.low %v469_v49, %v485_v47  ;;  %v494_v54 = vcombine.high %v469_v49, %v485_v47  ;;  %v509_v55 = vcombine.low %v476_v50, %v492_v48  ;;  %v510_v56 = vcombine.high %v476_v50, %v492_v48 }
 0x16e   : > { %v628_v57 = vcombine.low %v604_v42, %v610_v51  ;;  %v629_v58 = vcombine.high %v604_v42, %v610_v51  ;;  %v612_v59 = vcombine.low %v448_v28, %v607_v52  ;;  %v613_v60 = vcombine.high %v448_v28, %v607_v52 }
 0x16f   : > { %v501_v61 = vrot.slane %v493_v53, %v1324_v46  ;;  %v508_v62 = vrot.slane %v494_v54, %v1324_v46  ;;  %v517_v63 = vrot.slane %v509_v55, %v1324_v46  ;;  %v524_v0 = vrot.slane %v510_v56, %v1324_v46 }
 0x170   : > { %v636_v1 = vrot.slane %v628_v57, %v1322_v39  ;;  %v643_v2 = vrot.slane %v629_v58, %v1322_v39  ;;  %v620_v3 = vrot.slane %v612_v59, %v1322_v39  ;;  %v627_v4 = vrot.slane %v613_v60, %v1322_v39 }
 0x171   : > { %v529_v5 = vcombine.low %v501_v61, %v508_v62  ;;  %v975_v6 = vcombine.high %v501_v61, %v508_v62  ;;  %v545_v7 = vcombine.low %v517_v63, %v524_v0  ;;  %v976_v8 = vcombine.high %v517_v63, %v524_v0 }
 0x172   : > { %v644_v9 = vcombine.low %v620_v3, %v636_v1  ;;  %v645_v10 = vcombine.high %v620_v3, %v636_v1  ;;  %v660_v11 = vcombine.low %v627_v4, %v643_v2  ;;  %v661_v12 = vcombine.high %v627_v4, %v643_v2 }
 0x173   : > { %v536_v13 = vrot.slane %v529_v5, %v1322_v39  ;;  %v544_v14 = vrot.slane %v975_v6, %v1322_v39  ;;  %v552_v15 = vrot.slane %v545_v7, %v1322_v39  ;;  %v560_v16 = vrot.slane %v976_v8, %v1322_v39 }
 0x174   : > { %v652_v17 = vrot.slane %v644_v9, %v1324_v46  ;;  %v659_v18 = vrot.slane %v645_v10, %v1324_v46  ;;  %v668_v19 = vrot.slane %v660_v11, %v1324_v46  ;;  %v675_v20 = vrot.slane %v661_v12, %v1324_v46 }
 0x175   : > { %v561_v21 = vcombine.low %v536_v13, %v544_v14  ;;  %v562_v22 = vcombine.high %v536_v13, %v544_v14  ;;  %v577_v23 = vcombine.low %v552_v15, %v560_v16  ;;  %v578_v24 = vcombine.high %v552_v15, %v560_v16 }
 0x176   : > { %v680_v25 = vcombine.low %v652_v17, %v659_v18  ;;  %v977_v26 = vcombine.high %v652_v17, %v659_v18  ;;  %v696_v27 = vcombine.low %v668_v19, %v675_v20  ;;  %v978_v28 = vcombine.high %v668_v19, %v675_v20 }
 0x177   : > { %v569_v29 = vrot.slane %v561_v21, %v1324_v46  ;;  %v576_v30 = vrot.slane %v562_v22, %v1324_v46  ;;  %v585_v31 = vrot.slane %v577_v23, %v1324_v46  ;;  %v592_v32 = vrot.slane %v578_v24, %v1324_v46 }
 0x178   : > { %v687_v33 = vrot.slane %v680_v25, %v1322_v39  ;;  %v695_v34 = vrot.slane %v977_v26, %v1322_v39  ;;  %v703_v35 = vrot.slane %v696_v27, %v1322_v39  ;;  %v711_v36 = vrot.slane %v978_v28, %v1322_v39 }
 0x179   : > { %v593_v37 = vcombine.low %v569_v29, %v585_v31  ;;  %v594_v38 = vcombine.high %v569_v29, %v585_v31  ;;  %v595_v40 = vcombine.low %v576_v30, %v592_v32  ;;  %v596_v41 = vcombine.high %v576_v30, %v592_v32 }
 0x17a   : > { %v712_v42 = vcombine.low %v687_v33, %v695_v34  ;;  %v713_v43 = vcombine.high %v687_v33, %v695_v34  ;;  %v728_v44 = vcombine.low %v703_v35, %v711_v36  ;;  %v729_v45 = vcombine.high %v703_v35, %v711_v36 }
 0x17b   : > { %598 = vst.msk [vmem:[%s265_s14] sm:$0xff] %vm597_vm2, %v593_v37  ;;  %599 = vst.msk [vmem:[%s265_s14 + $0x8] sm:$0xff] %vm597_vm2, %v594_v38  ;;  %762 = sbr.rel (!%p1258_p5) target bundleno = 389 (0x185), region = 44 }
 0x17c   : > { %600 = vst.msk [vmem:[%s265_s14 + $0x10] sm:$0xff] %vm597_vm2, %v595_v40  ;;  %601 = vst.msk [vmem:[%s265_s14 + $0x18] sm:$0xff] %vm597_vm2, %v596_v41  ;;  %v720_v39 = vrot.slane %v712_v42, %v1324_v46  ;;  %v727_v47 = vrot.slane %v713_v43, %v1324_v46  ;;  %v736_v48 = vrot.slane %v728_v44, %v1324_v46 }
 0x17d   : > { %v743_v49 = vrot.slane %v729_v45, %v1324_v46 }
 0x17e   : > { %v744_v50 = vcombine.low %v720_v39, %v736_v48  ;;  %v745_v51 = vcombine.high %v720_v39, %v736_v48 }
 0x17f   : > { %v746_v52 = vcombine.low %v727_v47, %v743_v49  ;;  %v747_v53 = vcombine.high %v727_v47, %v743_v49 }
 0x180   : > { %748 = vst.msk [vmem:[%s271_s15] sm:$0xff] %vm597_vm2, %v744_v50  ;;  %749 = vst.msk [vmem:[%s271_s15 + $0x8] sm:$0xff] %vm597_vm2, %v745_v51 }
 0x181   : > { %750 = vst.msk [vmem:[%s271_s15 + $0x10] sm:$0xff] %vm597_vm2, %v746_v52  ;;  %751 = vst.msk [vmem:[%s271_s15 + $0x18] sm:$0xff] %vm597_vm2, %v747_v53 }
 0x182   : > { %v800_v46 = vld [vmem:[%s265_s14] sm:$0xff]  ;;  %v802_v54 = vld [vmem:[%s265_s14 + $0x8] sm:$0xff] }
 0x183   : > { %v804_v55 = vld [vmem:[%s265_s14 + $0x10] sm:$0xff]  ;;  %v806_v56 = vld [vmem:[%s265_s14 + $0x18] sm:$0xff]  ;;  %801 = vst [vmem:[%s766_s30] sm:$0xff] %v800_v46  ;;  %803 = vst [vmem:[%s766_s30 + $0x10] sm:$0xff] %v802_v54 }
 0x184   : > { %805 = vst [vmem:[%s766_s30 + $0x20] sm:$0xff] %v804_v55  ;;  %807 = vst [vmem:[%s766_s30 + $0x30] sm:$0xff] %v806_v56 }
 0x185 PF: > { %813 = sbr.rel (!%p1258_p5) target bundleno = 397 (0x18d), region = 82  ;;  %s983_s7 = sshll.u32 (%p1258_p5), %s1155_s24, 3 }
 0x186   : > { %s815_s9 = sadd.s32 (%p1258_p5), %s1151_s23, %s983_s7 }
 0x187   : > { %s984_s10 = sshll.u32 (%p1258_p5), %s815_s9, 3 }
 0x188   : > { %s817_s21 = scalar_lea.vmem (%p1258_p5), %s1412_s6, %s984_s10 }
 0x18a   : > { %v851_v57 = vld [vmem:[%s271_s15] sm:$0xff] (%p1258_p5)  ;;  %v853_v58 = vld [vmem:[%s271_s15 + $0x8] sm:$0xff] (%p1258_p5) }
 0x18b   : > { %v855_v59 = vld [vmem:[%s271_s15 + $0x10] sm:$0xff] (%p1258_p5)  ;;  %v857_v60 = vld [vmem:[%s271_s15 + $0x18] sm:$0xff] (%p1258_p5)  ;;  %852 = vst [vmem:[%s817_s21] sm:$0xff] (%p1258_p5), %v851_v57  ;;  %854 = vst [vmem:[%s817_s21 + $0x10] sm:$0xff] (%p1258_p5), %v853_v58 }
 0x18c   : > { %856 = vst [vmem:[%s817_s21 + $0x20] sm:$0xff] %v855_v59  ;;  %858 = vst [vmem:[%s817_s21 + $0x30] sm:$0xff] %v857_v60 }
 0x18d PF: > { %s17_s27 = sadd.s32 1, %s1167_s27   ;;  %s1414_s21 = smov %s1147_s22 }
 0x18e   : > { %p14_p11 = scmp.ge.s32.totalorder %s17_s27, 6   ;;  %s1415_s22 = smov %s1269_s12 }
 0x18f   : > { %s1416_s23 = smov %s1159_s25  ;;  %s1417_s24 = smov %s1163_s26 }
 0x190   : > { %s1418_s25 = smov %s1421_s28  ;;  %s1419_s26 = smov %s1425_s29 }
 0x191   :  { %16 = sbr.rel (!%p14_p11) target bundleno = 4 (0x4), region = 158 }

</bundles_post_ra>
